<compile_context>
chip_gen: v6e
topology: v6e:2x2x1
jax: 0.10.0
libtpu: 0.0.40
codegen_flags: <defaults>
</compile_context>

<pallas_src>
import functools

import jax
import jax.numpy as jnp
from jax.experimental import pallas as pl
from jax.experimental.pallas import tpu as pltpu

NEG_SLOPE = 0.1
BN_EPS = 1e-5


def _round_up(x, m):
    return (x + m - 1) // m * m


def _pick_tm(m):
    # Big layers: 256-wide M tiles (matches 256x256 MXU on v6e/v7x).
    # Tiny-spatial tail layers (M = 4 / 16 / 64): use the real (rounded) M so
    # the MXU does no redundant rows and the A-tile DMA stays skinny.
    if m >= 256:
        return 256
    return _round_up(m, 16)


def _pick_tn(np_):
    return 256 if np_ % 256 == 0 else 128


def _pick_tk(kp):
    # kp is already a multiple of 128.  Single K step when it fits comfortably;
    # otherwise the largest MXU-friendly divisor <= 512.
    if kp <= 1024:
        return kp
    for tk in (512, 384, 256, 128):
        if kp % tk == 0:
            return tk
    return 128


# ----------------------------------------------------------------------------
# Pallas kernel 1: tiled bf16 matmul + affine (folded BN / bias) + LeakyReLU
# ----------------------------------------------------------------------------
def _conv_mm_kernel(a_ref, b_ref, s_ref, c_ref, o_ref, acc_ref, *, apply_act):
    k = pl.program_id(2)

    @pl.when(k == 0)
    def _():
        acc_ref[...] = jnp.zeros_like(acc_ref)

    acc_ref[...] += jnp.dot(a_ref[...], b_ref[...],
                            preferred_element_type=jnp.float32)

    @pl.when(k == pl.num_programs(2) - 1)
    def _():
        y = acc_ref[...] * s_ref[...] + c_ref[...]
        if apply_act:
            y = jnp.where(y > 0, y, y * NEG_SLOPE)
        o_ref[...] = y.astype(o_ref.dtype)


def _matmul_affine_act(patches, wmat_p, scale_p, bias_p, apply_act, out_dtype):
    """patches: (M, K) bf16; wmat_p: (Kp, Np) bf16 (pre-padded at build time);
    scale_p/bias_p: (1, Np) f32.  Returns padded (Mp, Np) array of out_dtype."""
    M, K = patches.shape
    Kp, Np = wmat_p.shape
    TM = _pick_tm(M)
    TN = _pick_tn(Np)
    TK = _pick_tk(Kp)
    Mp = _round_up(M, TM)

    a = patches
    if Mp != M or Kp != K:
        a = jnp.pad(a, ((0, Mp - M), (0, Kp - K)))
    a = a.astype(jnp.bfloat16)

    out = pl.pallas_call(
        functools.partial(_conv_mm_kernel, apply_act=apply_act),
        out_shape=jax.ShapeDtypeStruct((Mp, Np), out_dtype),
        grid_spec=pltpu.PrefetchScalarGridSpec(
            num_scalar_prefetch=0,
            grid=(Mp // TM, Np // TN, Kp // TK),
            in_specs=[
                pl.BlockSpec((TM, TK), lambda i, j, k: (i, k)),
                pl.BlockSpec((TK, TN), lambda i, j, k: (k, j)),
                pl.BlockSpec((1, TN), lambda i, j, k: (0, j)),
                pl.BlockSpec((1, TN), lambda i, j, k: (0, j)),
            ],
            out_specs=pl.BlockSpec((TM, TN), lambda i, j, k: (i, j)),
            scratch_shapes=[pltpu.VMEM((TM, TN), jnp.float32)],
        ),
        compiler_params=pltpu.CompilerParams(
            dimension_semantics=("parallel", "parallel", "arbitrary")),
    )(a, wmat_p, scale_p, bias_p)
    return out


# ----------------------------------------------------------------------------
# Pallas kernel 2: YOLO head activations
#   columns 0:2 -> sigmoid, 2:4 -> exp, 4 -> sigmoid, 5: -> softmax (per row)
# ----------------------------------------------------------------------------
def _head_kernel(x_ref, o_ref):
    x = x_ref[...]
    r, d = x.shape
    col = jax.lax.broadcasted_iota(jnp.int32, (r, d), 1)

    sig = 1.0 / (1.0 + jnp.exp(-x))
    # exp only where it is actually used (cols 2:4) to avoid overflow in
    # discarded lanes.
    wh_mask = (col >= 2) & (col < 4)
    ex = jnp.exp(jnp.where(wh_mask, x, 0.0))

    cls_mask = col >= 5
    m = jnp.max(jnp.where(cls_mask, x, -jnp.inf), axis=-1, keepdims=True)
    e = jnp.where(cls_mask, jnp.exp(x - m), 0.0)
    soft = e / jnp.sum(e, axis=-1, keepdims=True)

    out = jnp.where(col < 2, sig,
          jnp.where(col < 4, ex,
          jnp.where(col < 5, sig, soft)))
    o_ref[...] = out.astype(o_ref.dtype)


def _run_head(conv5_nhwc, num_anchors, num_classes):
    B, H, W, C = conv5_nhwc.shape
    D = num_classes + 5
    flat = conv5_nhwc.reshape(B * H * W * num_anchors, D).astype(jnp.float32)
    R = flat.shape[0]
    Rp = _round_up(R, 8)
    xp = jnp.pad(flat, ((0, Rp - R), (0, 0)))

    out = pl.pallas_call(
        _head_kernel,
        out_shape=jax.ShapeDtypeStruct((Rp, D), jnp.float32),
    )(xp)[:R]

    final = out.reshape(B, H * W, num_anchors, D)
    aoff_pred = final[..., 0:4]
    iou_pred = final[..., 4:5]
    prob_pred = final[..., 5:]
    return aoff_pred, iou_pred, prob_pred


# ----------------------------------------------------------------------------
# Glue: im2col, maxpool, reorg (pure layout ops)
# ----------------------------------------------------------------------------
def _im2col(x, ksize):
    # x: (N, H, W, C) bf16, stride 1, "same" padding (padding = (k-1)//2)
    N, H, W, C = x.shape
    if ksize == 1:
        return x.reshape(N * H * W, C)
    pad = (ksize - 1) // 2
    xp = jnp.pad(x, ((0, 0), (pad, pad), (pad, pad), (0, 0)))
    cols = []
    for dy in range(ksize):
        for dx in range(ksize):
            cols.append(xp[:, dy:dy + H, dx:dx + W, :])
    return jnp.concatenate(cols, axis=-1).reshape(N * H * W, ksize * ksize * C)


def conv_layer(x, packed, relu, out_dtype=jnp.bfloat16):
    N, H, W, Cin = x.shape
    ksize = packed["ksize"]
    Cout = packed["cout"]
    patches = _im2col(x, ksize)
    out = _matmul_affine_act(patches, packed["wmat"], packed["scale"],
                             packed["bias"], relu, out_dtype)
    M = N * H * W
    out = out[:M, :Cout]
    return out.reshape(N, H, W, Cout)


def maxpool2x2(x):
    N, H, W, C = x.shape
    return x.reshape(N, H // 2, 2, W // 2, 2, C).max(axis=(2, 4))


def reorg(x_nhwc, stride=2):
    # semantics of yolo2 ReorgLayer (stride=2): (B,C,H,W) -> (B, C*s*s, H/s, W/s)
    x = jnp.transpose(x_nhwc, (0, 3, 1, 2))   # NCHW
    B, C, H, W = x.shape
    hs = ws = stride
    x = x.reshape(B, C, H // hs, hs, W // ws, ws)
    x = jnp.transpose(x, (0, 1, 2, 4, 3, 5))
    x = x.reshape(B, C, (H // hs) * (W // ws), hs * ws)
    x = jnp.transpose(x, (0, 1, 3, 2))
    x = x.reshape(B, C, hs * ws, H // hs, W // ws)
    x = jnp.transpose(x, (0, 2, 1, 3, 4))
    x = x.reshape(B, hs * ws * C, H // hs, W // ws)
    return jnp.transpose(x, (0, 2, 3, 1))      # back to NHWC


# ----------------------------------------------------------------------------
# Parameter construction + build-time packing (weights reshaped, BN folded,
# padded to (Kp, Np), cast to bf16 exactly once).
# ----------------------------------------------------------------------------
def _init_conv_bn(key, cin, cout, k):
    kw, kg, kb, km, kv = jax.random.split(key, 5)
    fan_in = cin * k * k
    return {
        "w": jax.random.normal(kw, (cout, cin, k, k), jnp.float32)
             * (0.5 / jnp.sqrt(fan_in)),
        "gamma": 1.0 + 0.1 * jax.random.normal(kg, (cout,), jnp.float32),
        "beta": 0.1 * jax.random.normal(kb, (cout,), jnp.float32),
        "mean": 0.1 * jax.random.normal(km, (cout,), jnp.float32),
        "var": jnp.abs(1.0 + 0.1 * jax.random.normal(kv, (cout,), jnp.float32)),
    }


def _init_conv_bias(key, cin, cout, k):
    kw, kb = jax.random.split(key)
    fan_in = cin * k * k
    return {
        "w": jax.random.normal(kw, (cout, cin, k, k), jnp.float32)
             * (0.5 / jnp.sqrt(fan_in)),
        "bias": 0.01 * jax.random.normal(kb, (cout,), jnp.float32),
    }


def _pack_conv(raw, ksize, cin, cout):
    w = raw["w"]                                     # (Cout, Cin, k, k) OIHW
    wmat = jnp.transpose(w, (2, 3, 1, 0)).reshape(ksize * ksize * cin, cout)
    if "gamma" in raw:                               # conv + BN + leaky
        scale = raw["gamma"] / jnp.sqrt(raw["var"] + BN_EPS)
        bias = raw["beta"] - raw["mean"] * scale
    else:                                            # conv + bias, no BN
        scale = jnp.ones((cout,), jnp.float32)
        bias = raw["bias"]
    K = ksize * ksize * cin
    Kp = _round_up(K, 128)
    Np = _round_up(cout, 128)
    wmat_p = jnp.pad(wmat, ((0, Kp - K), (0, Np - cout))).astype(jnp.bfloat16)
    scale_p = jnp.pad(scale, (0, Np - cout)).reshape(1, Np).astype(jnp.float32)
    bias_p = jnp.pad(bias, (0, Np - cout)).reshape(1, Np).astype(jnp.float32)
    return {"wmat": wmat_p, "scale": scale_p, "bias": bias_p,
            "ksize": ksize, "cout": cout}


def _build_seq(key, cin, cfg):
    layers = []
    for item in cfg:
        if item == "M":
            layers.append(("M", None))
        else:
            cout, k = item
            key, sub = jax.random.split(key)
            raw = _init_conv_bn(sub, cin, cout, k)
            layers.append(("C", _pack_conv(raw, k, cin, cout)))
            cin = cout
    return layers, cin, key


def _run_seq(x, layers):
    for kind, packed in layers:
        if kind == "M":
            x = maxpool2x2(x)
        else:
            x = conv_layer(x, packed, relu=True)
    return x


# ----------------------------------------------------------------------------
# Darknet19 model
# ----------------------------------------------------------------------------
def build_darknet19_params(key, num_classes=20, num_anchors=5):
    conv1s_cfg = [(32, 3),
                  "M", (64, 3),
                  "M", (128, 3), (64, 1), (128, 3),
                  "M", (256, 3), (128, 1), (256, 3),
                  "M", (512, 3), (256, 1), (512, 3), (256, 1), (512, 3)]
    conv2_cfg = ["M", (1024, 3), (512, 1), (1024, 3), (512, 1), (1024, 3)]
    conv3_cfg = [(1024, 3), (1024, 3)]

    params = {}
    params["conv1s"], c1, key = _build_seq(key, 3, conv1s_cfg)
    params["conv2"], c2, key = _build_seq(key, c1, conv2_cfg)
    params["conv3"], c3, key = _build_seq(key, c2, conv3_cfg)
    reorg_out = c1 * 4  # ReorgLayer(stride=2).out_channels
    params["conv4"], c4, key = _build_seq(key, reorg_out + c3, [(1024, 3)])
    key, sub = jax.random.split(key)
    out_channels = num_anchors * (num_classes + 5)
    raw5 = _init_conv_bias(sub, c4, out_channels, 1)
    params["conv5"] = _pack_conv(raw5, 1, c4, out_channels)
    return params


def darknet19_forward(im_data_nchw, params, num_classes=20, num_anchors=5):
    # im_data_nchw: (B, 3, H, W) float32, H and W multiples of 32
    x = jnp.transpose(im_data_nchw, (0, 2, 3, 1)).astype(jnp.bfloat16)  # NHWC

    conv1s = _run_seq(x, params["conv1s"])
    conv2 = _run_seq(conv1s, params["conv2"])
    conv3 = _run_seq(conv2, params["conv3"])
    conv1s_reorg = reorg(conv1s, stride=2)
    cat_1_3 = jnp.concatenate([conv1s_reorg, conv3], axis=-1)
    conv4 = _run_seq(cat_1_3, params["conv4"])
    # final 1x1 conv (linear): keep its output in f32 for the head
    conv5 = conv_layer(conv4, params["conv5"], relu=False, out_dtype=jnp.float32)

    return _run_head(conv5, num_anchors, num_classes)


if __name__ == "__main__":
    num_classes, num_anchors = 20, 5
    B, H, W = 1, 64, 64  # small but /32-compatible input (output grid 2x2)

    key = jax.random.PRNGKey(0)
    key, pkey, xkey = jax.random.split(key, 3)
    params = build_darknet19_params(pkey, num_classes, num_anchors)
    im_data = jax.random.normal(xkey, (B, 3, H, W), jnp.float32)

    aoff_pred, iou_pred, prob_pred = darknet19_forward(
        im_data, params, num_classes, num_anchors)
    jax.block_until_ready((aoff_pred, iou_pred, prob_pred))

    hw = (H // 32) * (W // 32)
    assert aoff_pred.shape == (B, hw, num_anchors, 4), aoff_pred.shape
    assert iou_pred.shape == (B, hw, num_anchors, 1), iou_pred.shape
    assert prob_pred.shape == (B, hw, num_anchors, num_classes), prob_pred.shape
    assert bool(jnp.all(jnp.isfinite(aoff_pred)))
    assert bool(jnp.all(jnp.isfinite(prob_pred)))
    print("KERNEL_OK")
</pallas_src>

<mosaic_0001>
module attributes {stable_mosaic.version = 11 : i64} {
  func.func @_conv_mm_kernel(%arg0: i32, %arg1: i32, %arg2: i32, %arg3: memref<256x128xbf16, #tpu.memory_space<vmem>>, %arg4: memref<128x128xbf16, #tpu.memory_space<vmem>>, %arg5: memref<1x128xf32, #tpu.memory_space<vmem>>, %arg6: memref<1x128xf32, #tpu.memory_space<vmem>>, %arg7: memref<256x128xbf16, #tpu.memory_space<vmem>>, %arg8: memref<256x128xf32, #tpu.memory_space<vmem>>) attributes {dimension_semantics = [#tpu.dimension_semantics<parallel>, #tpu.dimension_semantics<parallel>, #tpu.dimension_semantics<arbitrary>], iteration_bounds = array<i64: 16, 1, 1>, scalar_prefetch = 0 : i64, scratch_operands = 1 : i64, tpu.core_type = #tpu.core_type<tc>, window_params = [{transform_indices = @transform_0, window_bounds = array<i64: 256, 128>}, {transform_indices = @transform_1, window_bounds = array<i64: 128, 128>}, {transform_indices = @transform_2, window_bounds = array<i64: 1, 128>}, {transform_indices = @transform_3, window_bounds = array<i64: 1, 128>}, {transform_indices = @transform_4, window_bounds = array<i64: 256, 128>}]} {
    %c0_i32 = arith.constant 0 : i32
    %0 = arith.cmpi eq, %arg2, %c0_i32 : i32
    %1 = arith.extui %0 : i1 to i32
    %c0_i32_0 = arith.constant 0 : i32
    %2 = arith.cmpi ne, %1, %c0_i32_0 : i32
    scf.if %2 {
      %cst_10 = arith.constant 0.000000e+00 : f32
      %12 = vector.broadcast %cst_10 : f32 to vector<256x128xf32>
      %c0_11 = arith.constant 0 : index
      %c0_12 = arith.constant 0 : index
      %13 = vector.load %arg8[%c0_11, %c0_12] : memref<256x128xf32, #tpu.memory_space<vmem>>, vector<256x128xf32>
      tpu.vector_store %arg8[%c0_11, %c0_12], %12 {strides = array<i32>} : memref<256x128xf32, #tpu.memory_space<vmem>>, vector<256x128xf32>,
    } else {
    }
    %c0 = arith.constant 0 : index
    %c0_1 = arith.constant 0 : index
    %3 = vector.load %arg8[%c0, %c0_1] : memref<256x128xf32, #tpu.memory_space<vmem>>, vector<256x128xf32>
    %c0_2 = arith.constant 0 : index
    %c0_3 = arith.constant 0 : index
    %4 = vector.load %arg3[%c0_2, %c0_3] : memref<256x128xbf16, #tpu.memory_space<vmem>>, vector<256x128xbf16>
    %c0_4 = arith.constant 0 : index
    %c0_5 = arith.constant 0 : index
    %5 = vector.load %arg4[%c0_4, %c0_5] : memref<128x128xbf16, #tpu.memory_space<vmem>>, vector<128x128xbf16>
    %cst = arith.constant dense<0.000000e+00> : vector<256x128xf32>
    %6 = tpu.matmul %4, %5, %cst {dimension_numbers = #tpu.dot_dimension_numbers<[1], [0], [0], [1], [0, 0, 1, 1], [], []>} : vector<256x128xbf16>, vector<128x128xbf16>, vector<256x128xf32> -> vector<256x128xf32>
    %7 = arith.addf %3, %6 : vector<256x128xf32>
    %c0_6 = arith.constant 0 : index
    %c0_7 = arith.constant 0 : index
    %8 = vector.load %arg8[%c0_6, %c0_7] : memref<256x128xf32, #tpu.memory_space<vmem>>, vector<256x128xf32>
    tpu.vector_store %arg8[%c0_6, %c0_7], %7 {strides = array<i32>} : memref<256x128xf32, #tpu.memory_space<vmem>>, vector<256x128xf32>,
    %c0_i32_8 = arith.constant 0 : i32
    %9 = arith.cmpi eq, %arg2, %c0_i32_8 : i32
    %10 = arith.extui %9 : i1 to i32
    %c0_i32_9 = arith.constant 0 : i32
    %11 = arith.cmpi ne, %10, %c0_i32_9 : i32
    scf.if %11 {
      %c0_10 = arith.constant 0 : index
      %c0_11 = arith.constant 0 : index
      %12 = vector.load %arg8[%c0_10, %c0_11] : memref<256x128xf32, #tpu.memory_space<vmem>>, vector<256x128xf32>
      %c0_12 = arith.constant 0 : index
      %c0_13 = arith.constant 0 : index
      %13 = vector.load %arg5[%c0_12, %c0_13] : memref<1x128xf32, #tpu.memory_space<vmem>>, vector<1x128xf32>
      %14 = vector.broadcast %13 : vector<1x128xf32> to vector<256x128xf32>
      %15 = arith.mulf %12, %14 : vector<256x128xf32>
      %c0_14 = arith.constant 0 : index
      %c0_15 = arith.constant 0 : index
      %16 = vector.load %arg6[%c0_14, %c0_15] : memref<1x128xf32, #tpu.memory_space<vmem>>, vector<1x128xf32>
      %17 = vector.broadcast %16 : vector<1x128xf32> to vector<256x128xf32>
      %18 = arith.addf %15, %17 : vector<256x128xf32>
      %cst_16 = arith.constant 0.000000e+00 : f32
      %19 = vector.broadcast %cst_16 : f32 to vector<256x128xf32>
      %20 = arith.cmpf ogt, %18, %19 : vector<256x128xf32>
      %cst_17 = arith.constant 1.000000e-01 : f32
      %21 = vector.broadcast %cst_17 : f32 to vector<256x128xf32>
      %22 = arith.mulf %18, %21 : vector<256x128xf32>
      %23 = arith.select %20, %18, %22 : vector<256x128xi1>, vector<256x128xf32>
      %24 = arith.truncf %23 : vector<256x128xf32> to vector<256x128xbf16>
      %c0_18 = arith.constant 0 : index
      %c0_19 = arith.constant 0 : index
      %25 = vector.load %arg7[%c0_18, %c0_19] : memref<256x128xbf16, #tpu.memory_space<vmem>>, vector<256x128xbf16>
      tpu.vector_store %arg7[%c0_18, %c0_19], %24 {strides = array<i32>} : memref<256x128xbf16, #tpu.memory_space<vmem>>, vector<256x128xbf16>,
    } else {
    }
    return
  }
  func.func @transform_0(%arg0: i32, %arg1: i32, %arg2: i32) -> (i32, i32) {
    %c0_i32 = arith.constant 0 : i32
    return %arg0, %arg2 : i32, i32
  }
  func.func @transform_1(%arg0: i32, %arg1: i32, %arg2: i32) -> (i32, i32) {
    %c0_i32 = arith.constant 0 : i32
    return %arg2, %arg1 : i32, i32
  }
  func.func @transform_2(%arg0: i32, %arg1: i32, %arg2: i32) -> (i32, i32) {
    %c0_i32 = arith.constant 0 : i32
    %c0_i32_0 = arith.constant 0 : i32
    return %c0_i32, %arg1 : i32, i32
  }
  func.func @transform_3(%arg0: i32, %arg1: i32, %arg2: i32) -> (i32, i32) {
    %c0_i32 = arith.constant 0 : i32
    %c0_i32_0 = arith.constant 0 : i32
    return %c0_i32, %arg1 : i32, i32
  }
  func.func @transform_4(%arg0: i32, %arg1: i32, %arg2: i32) -> (i32, i32) {
    %c0_i32 = arith.constant 0 : i32
    return %arg0, %arg1 : i32, i32
  }
}

</mosaic_0001>

<bundles_post_ra>
// kernel: tpu_custom_call.1
= control target key start
LH: loop header
LB: loop body
LE: loop exit
PB: predicated region body
PF: predicated region fallthrough
CT: control target
= control target key end

     0   :  { %s2162_s0 = inlined_call_operand.hbm [shape: bf16[4096,128], index: 0, kind: input, shape index: {}]   ;;  %s2163_s1 = inlined_call_operand.hbm [shape: bf16[128,128], index: 1, kind: input, shape index: {}]   ;;  %s2164_s2 = inlined_call_operand.vmem [shape: f32[1,128], index: 2, kind: input, shape index: {}]   ;;  %s2165_s3 = inlined_call_operand.vmem [shape: f32[1,128], index: 3, kind: input, shape index: {}]   ;;  %s2166_s4 = inlined_call_operand.hbm [shape: bf16[4096,128], index: 4, kind: output, shape index: {}]  }
   0x1   :  { %2170 = sst [smem:[#allocation12_spill]] %s2163_s1 }
   0x2   :  { %9 = vsyncpa [#allocation4], 0 }
   0x3   :  { %11 = vsyncpa [#allocation4 + $0x1], 0 }
   0x4   :  { %12 = vsyncpa [#allocation7], 0 }
   0x5   :  { %13 = vsyncpa [#allocation5], 0 }
   0x6   :  { %15 = vsyncpa [#allocation5 + $0x1], 0  ;;  %s1860_s15 = smov 0   ;;  %s1862_s16 = smov 0  }
   0x7   :  { %s1864_s17 = smov 0   ;;  %s1866_s18 = smov 0  }
   0x8   :  { %s1868_s19 = smov 0   ;;  %s1870_s20 = smov 0  }
   0x9 LB: > { %s1293_s21 = sadd.s32 4294967295, %s1826_s20   ;;  %s1294_s22 = sadd.s32 4294967294, %s1826_s20   ;;  %s1826_s20 = sphi %s1870_s20, %s21_s20   ;;  %s1822_s19 = sphi %s1868_s19, %s2189_s19   ;;  %s1818_s18 = sphi %s1866_s18, %s2188_s18   ;;  %s1814_s17 = sphi %s1864_s17, %s2187_s17   ;;  %s1810_s16 = sphi %s1862_s16, %s2186_s16   ;;  %s1806_s15 = sphi %s1860_s15, %s2185_s15  }
   0xa   : > { %p62_p0 = scmp.ne.s32.totalorder %s1810_s16, %s1806_s15  ;;  %p1894_p1 = scmp.eq.s32.totalorder %s1293_s21, 0 }
   0xb   : > { %p1898_p2 = scmp.eq.s32.totalorder %s1293_s21, 15  ;;  %p174_p3 = scmp.eq.s32.totalorder %s1294_s22, 15 }
   0xc   : > { %p1904_p4 = por %p1894_p1, %p62_p0  ;;  %p1295_p5 = scmp.ge.s32.totalorder %s1826_s20, 1 }
   0xd   : > { %p1909_p6 = por %p174_p3, %p62_p0  ;;  %p181_p7 = scmp.lt.s32.totalorder %s1826_s20, 17 }
   0xe   : > { %s1828_s28 = smov [#allocation6]   ;;  %s40_s5 = sadd.s32 1, %s1822_s19 }
   0xf   : > { %s2174_s26 = scalar_select %p1909_p6, 1, 0 }
  0x10   : > { %p1914_p8 = pnand %p1295_p5, %p181_p7  ;;  %s197_s29 = sshll.u32 %s1828_s28, 4  ;;  %s198_s29 = int_to_ptr.vmem [resolvable:$true] %s197_s29 }
  0x11   : > { %s1699_s6 = scalar_lea.vmem %s198_s29, 1024  ;;  %p1707_p3 = scmp.lt.s32.totalorder %s198_s29, %s198_s29 }
  0x12   : > { %p1595_p9 = pneg %p1914_p8  ;;  %p1700_p12 = scmp.ne.s32.totalorder %s198_s29, %s1699_s6 }
  0x13   : > { %p1708_p5 = scmp.lt.s32.totalorder %s1699_s6, %s1699_s6 }
  0x14   : > { %p1922_p10 = pnand %p1595_p9, %p1894_p1 }
  0x15   : > { %p1709_p7 = por %p1708_p5, %p1707_p3 }
  0x16   : > { %p1690_p11 = pneg %p1922_p10 }
  0x18   : > { %p1702_p13 = pnand %p1700_p12, %p1690_p11 }
  0x1a   : > { %p1703_p0 = pneg %p1702_p13 }
  0x1c   : > { %p1710_p6 = pnand %p1709_p7, %p1703_p0 }
  0x1e   : > { %1713 = shalt.err (!%p1710_p6)
}
  0x1f   : > { %s2167_s7 = smov 64   ;;  %s2168_s8 = smov 4  }
  0x20   : > { %s2177_s1 = sld [smem:[#allocation12_spill]]  ;;  %p42_p6 = scmp.ge.s32.totalorder %s40_s5, 16 }
  0x21   : > { %s49_s11 = sadd.s32 1, %s1814_s17  ;;  %p56_p9 = scmp.ne.s32.totalorder %s1814_s17, %s1810_s16 }
  0x22   : > { %p57_p11 = scmp.eq.s32.totalorder %s1826_s20, 0  ;;  %s2191_s5 = smov (%p42_p6, %s40_s5), 0 }
  0x23   : > { %p1949_p13 = por %p1898_p2, %p56_p9  ;;  %s44_s14 = ssub.s32 %s1822_s19, %s2191_s5 }
  0x24   : > { %p1943_p12 = por %p57_p11, %p56_p9  ;;  %p1608_p0 = scmp.lt.s32.totalorder %s1826_s20, 16 }
  0x25   : > { %s2179_s13 = scalar_select %p1949_p13, 1, 0 }
  0x26   : > { %1598 = dma.hbm_to_vmem [thread:$0]  (!%p1922_p10), %s2177_s1, 1024, %s198_s29, [#allocation7], %s2167_s7, %s2167_s7, %s2168_s8  }
  0x27   : > { %p47_p10 = scmp.eq.s32.totalorder %s44_s14, 0  ;;  %s223_s21 = sand.u32 1, %s1814_s17  }
  0x28   : > { %s1300_s22 = sshll.u32 %s223_s21, 7  ;;  %s1370_s29 = sshll.u32 %s1822_s19, 11 }
  0x29   : > { %s1958_s28 = scalar_select %p47_p10, %s1814_s17, %s49_s11  }
  0x2a   : > { %s234_s9 = scalar_lea.hbm %s2162_s0, %s1370_s29  ;;  %s227_s10 = scalar_lea.vmem [#allocation3], %s1300_s22 }
  0x2b   : > { %s235_s7 = sshll.u32 %s227_s10, 4  ;;  %p1966_p2 = pnand %p1608_p0, %p1943_p12  ;;  %s236_s7 = int_to_ptr.vmem [resolvable:$true] %s235_s7 }
  0x2c   : > { %s224_s8 = scalar_lea.sflag [#allocation4], %s223_s21  ;;  %s1727_s14 = scalar_lea.vmem %s236_s7, 2048 }
  0x2d   : > { %p1716_p3 = pneg %p1966_p2  ;;  %p1728_p5 = scmp.ne.s32.totalorder %s236_s7, %s1727_s14 }
  0x2e   : > { %s1831_s11 = smov [#allocation3]  }
  0x2f   : > { %p1730_p7 = pnand %p1728_p5, %p1716_p3  ;;  %s1732_s1 = sshll.u32 %s1831_s11, 4  ;;  %s1733_s1 = int_to_ptr.vmem [resolvable:$false] %s1732_s1 }
  0x30   : > { %s1734_s29 = scalar_lea.vmem %s1733_s1, 4096  ;;  %p1735_p9 = scmp.lt.s32.totalorder %s236_s7, %s1733_s1 }
  0x31   : > { %p1731_p6 = pneg %p1730_p7  ;;  %p1736_p11 = scmp.lt.s32.totalorder %s1734_s29, %s1727_s14 }
  0x33   : > { %p1737_p10 = por %p1736_p11, %p1735_p9 }
  0x35   : > { %p1738_p13 = pnand %p1737_p10, %p1731_p6 }
  0x37   : > { %1741 = shalt.err (!%p1738_p13)
}
  0x38   : > { %s2181_s12 = smov 4   ;;  %s2182_s22 = smov 64  }
  0x39   : > { %1602 = dma.hbm_to_vmem [thread:$0]  (!%p1966_p2), %s234_s9, 2048, %s236_s7, %s224_s8, %s2182_s22, %s2182_s22, %s2181_s12  }
  0x3a   : > { %247 = sbr.rel (%p1914_p8) target bundleno = 357 (0x165), region = 36  ;;  %s1980_s21 = sand.u32 (!%p1914_p8), 1, %s1810_s16  }
  0x3b   : > { %s1304_s1 = sshll.u32 (!%p1914_p8), %s1980_s21, 7  ;;  %s250_s30 = scalar_lea.sflag (!%p1914_p8), [#allocation4], %s1980_s21 }
  0x3c   : > { %s1986_s6 = scalar_lea.vmem (!%p1914_p8), [#allocation3], %s1304_s1 }
  0x3f   : > { %1793 = dma.done.wait (%p1904_p4), %s250_s30, 2048  }
  0x40   : > { %1795 = vsyncadd (%p1904_p4), %s250_s30, 4294965248 }
  0x41   : > { %1797 = dma.done.wait (%p1894_p1), [#allocation7], 1024  }
  0x42   : > { %1799 = vsyncadd (%p1894_p1), [#allocation7], 4294966272  ;;  %v1664_v0 = vld [vmem:[#allocation6 + $0x38] sm:$0xff]   ;;  %v1665_v1 = vld [vmem:[#allocation6 + $0x30] sm:$0xff]   ;;  %s2044_s8 = scalar_lea.vmem [#allocation8], %s1304_s1  ;;  %s1403_s9 = sshll.u32 %s1818_s18, 11 }
  0x43   : > { %1523 = vmatprep.subr.bf16.mxu0 %v1664_v0  ;;  %1571 = vmatprep.subr.bf16.mxu1 %v1664_v0  ;;  %v1666_v2 = vld [vmem:[#allocation6 + $0x28] sm:$0xff]   ;;  %v1667_v3 = vld [vmem:[#allocation6 + $0x20] sm:$0xff]   ;;  %v1668_v6 = vld [vmem:[#allocation6 + $0x18] sm:$0xff]   ;;  %s1167_s10 = sshll.u32 %s2044_s8, 4  ;;  %s2112_s11 = scalar_lea.hbm %s2166_s4, %s1403_s9  ;;  %s2114_s10 = int_to_ptr.vmem [resolvable:$true] %s1167_s10 }
  0x44   : > { %1524 = vmatpush3.bf16.msra.mxu0 %v1664_v0  ;;  %1579 = vmatpush3.bf16.msra.mxu1 %v1664_v0  ;;  %v1672_v4 = vld [vmem:[%s1986_s6] sm:$0xff]   ;;  %v1669_v7 = vld [vmem:[#allocation6 + $0x10] sm:$0xff]   ;;  %v1670_v8 = vld [vmem:[#allocation6 + $0x8] sm:$0xff]   ;;  %s1153_s18 = scalar_lea.sflag [#allocation5], %s1980_s21  ;;  %s1742_s29 = scalar_lea.vmem %s2114_s10, 2048 }
  0x45   : > { %1525 = vmatprep.subr.bf16.mxu0 %v1665_v1  ;;  %1572 = vmatprep.subr.bf16.mxu1 %v1665_v1  ;;  %v1673_v5 = vld [vmem:[%s1986_s6 + $0x40] sm:$0xff]   ;;  %v1674_v10 = vld [vmem:[%s1986_s6 + $0x8] sm:$0xff]   ;;  %v1676_v12 = vld [vmem:[%s1986_s6 + $0x10] sm:$0xff]   ;;  %p1743_p1 = scmp.ne.s32.totalorder %s2114_s10, %s1742_s29  ;;  %p2183_p4 = scmp.ne.s32.totalorder %s2179_s13, 0 }
  0x46   : > { %1539 = vmatprep.mubr.bf16.mxu0 %v1672_v4  ;;  %1555 = vmatprep.mubr.bf16.mxu1 %v1673_v5  ;;  %v1671_v9 = vld [vmem:[#allocation6] sm:$0xff]   ;;  %v1675_v11 = vld [vmem:[%s1986_s6 + $0x48] sm:$0xff]   ;;  %v1677_v13 = vld [vmem:[%s1986_s6 + $0x50] sm:$0xff]   ;;  %s1832_s12 = smov [#allocation8]  }
  0x47   : > { %v1678_v14 = vld [vmem:[%s1986_s6 + $0x18] sm:$0xff]   ;;  %v1680_v16 = vld [vmem:[%s1986_s6 + $0x20] sm:$0xff]   ;;  %v1682_v18 = vld [vmem:[%s1986_s6 + $0x28] sm:$0xff]   ;;  %p1744_p8 = pnand %p1743_p1, %p2183_p4  ;;  %s1746_s22 = sshll.u32 %s1832_s12, 4  ;;  %s1747_s22 = int_to_ptr.vmem [resolvable:$false] %s1746_s22 }
  0x48   : > { %1526 = vmatpush3.bf16.msra.mxu0 %v1665_v1  ;;  %1580 = vmatpush3.bf16.msra.mxu1 %v1665_v1  ;;  %v1679_v15 = vld [vmem:[%s1986_s6 + $0x58] sm:$0xff]   ;;  %v1681_v17 = vld [vmem:[%s1986_s6 + $0x60] sm:$0xff]   ;;  %v1683_v19 = vld [vmem:[%s1986_s6 + $0x68] sm:$0xff]   ;;  %s1748_s1 = scalar_lea.vmem %s1747_s22, 4096  ;;  %p1749_p13 = scmp.lt.s32.totalorder %s2114_s10, %s1747_s22 }
  0x49   : > { %1527 = vmatprep.subr.bf16.mxu0 %v1666_v2  ;;  %1573 = vmatprep.subr.bf16.mxu1 %v1666_v2  ;;  %v1684_v20 = vld [vmem:[%s1986_s6 + $0x30] sm:$0xff]   ;;  %v1686_v22 = vld [vmem:[%s1986_s6 + $0x38] sm:$0xff]   ;;  %v2015_v24 = vld [vmem:[%s2164_s2] ss:$0 sm:$0xff]  ;;  %p1745_p12 = pneg %p1744_p8  ;;  %p1750_p0 = scmp.lt.s32.totalorder %s1748_s1, %s1742_s29 }
  0x4a   : > { %v1685_v21 = vld [vmem:[%s1986_s6 + $0x70] sm:$0xff]   ;;  %v1687_v23 = vld [vmem:[%s1986_s6 + $0x78] sm:$0xff]   ;;  %v2020_v26 = vld [vmem:[%s2165_s3] ss:$0 sm:$0xff] }
  0x4b   : > { %p1751_p2 = por %p1750_p0, %p1749_p13 }
  0x4c   : > { %1528 = vmatpush3.bf16.msra.mxu0 %v1666_v2  ;;  %1581 = vmatpush3.bf16.msra.mxu1 %v1666_v2 }
  0x4d   : > { %1529 = vmatprep.subr.bf16.mxu0 %v1667_v3  ;;  %1574 = vmatprep.subr.bf16.mxu1 %v1667_v3  ;;  %p1752_p3 = pnand %p1751_p2, %p1745_p12 }
  0x50   : > { %1530 = vmatpush3.bf16.msra.mxu0 %v1667_v3  ;;  %1582 = vmatpush3.bf16.msra.mxu1 %v1667_v3 }
  0x51   : > { %1531 = vmatprep.subr.bf16.mxu0 %v1668_v6  ;;  %1575 = vmatprep.subr.bf16.mxu1 %v1668_v6 }
  0x54   : > { %1532 = vmatpush3.bf16.msra.mxu0 %v1668_v6  ;;  %1583 = vmatpush3.bf16.msra.mxu1 %v1668_v6 }
  0x55   : > { %1533 = vmatprep.subr.bf16.mxu0 %v1669_v7  ;;  %1576 = vmatprep.subr.bf16.mxu1 %v1669_v7 }
  0x58   : > { %1534 = vmatpush3.bf16.msra.mxu0 %v1669_v7  ;;  %1584 = vmatpush3.bf16.msra.mxu1 %v1669_v7 }
  0x59   : > { %1535 = vmatprep.subr.bf16.mxu0 %v1670_v8  ;;  %1577 = vmatprep.subr.bf16.mxu1 %v1670_v8 }
  0x5c   : > { %1536 = vmatpush3.bf16.msra.mxu0 %v1670_v8  ;;  %1585 = vmatpush3.bf16.msra.mxu1 %v1670_v8 }
  0x5d   : > { %1537 = vmatprep.subr.bf16.mxu0 %v1671_v9  ;;  %1578 = vmatprep.subr.bf16.mxu1 %v1671_v9 }
  0x60   : > { %1538 = vmatpush3.bf16.msra.mxu0 %v1671_v9  ;;  %1586 = vmatpush3.bf16.msra.mxu1 %v1671_v9 }
  0x63   : > { %1540 = vmatmul.mubr.bf16.vlgmr.msra.gmra.mxu0 %v1674_v10  ;;  %1556 = vmatmul.mubr.bf16.vlgmr.msra.gmra.mxu1 %v1675_v11 }
  0x64   : > { %1543 = vmatprep.mubr.bf16.mxu0 %v1676_v12  ;;  %1559 = vmatprep.mubr.bf16.mxu1 %v1677_v13 }
  0x6b   : > { %1544 = vmatmul.mubr.bf16.gmra.mxu0 %v1678_v14  ;;  %1560 = vmatmul.mubr.bf16.gmra.mxu1 %v1679_v15 }
  0x6c   : > { %1547 = vmatprep.mubr.bf16.mxu0 %v1680_v16  ;;  %1563 = vmatprep.mubr.bf16.mxu1 %v1681_v17 }
  0x73   : > { %1548 = vmatmul.mubr.bf16.gmra.mxu0 %v1682_v18  ;;  %1564 = vmatmul.mubr.bf16.gmra.mxu1 %v1683_v19 }
  0x74   : > { %1551 = vmatprep.mubr.bf16.mxu0 %v1684_v20  ;;  %1567 = vmatprep.mubr.bf16.mxu1 %v1685_v21 }
  0x7b   : > { %1552 = vmatmul.mubr.bf16.gmra.mxu0 %v1686_v22  ;;  %1568 = vmatmul.mubr.bf16.gmra.mxu1 %v1687_v23 }
 0x123   : > { %v1541_v25 = vpop.f32.mrf.mxu0  ;;  %v1557_v27 = vpop.f32.mrf.mxu1 }
 0x124   : > { %v827_v28 = vmul.f32 %v1541_v25, %v2015_v24  ;;  %v843_v29 = vmul.f32 %v1557_v27, %v2015_v24 }
 0x125   : > { %v592_v30 = vpop.f32.mrf.mxu0  ;;  %v656_v31 = vpop.f32.mrf.mxu1 }
 0x126   : > { %v866_v32 = vadd.f32 %v2020_v26, %v827_v28  ;;  %v882_v33 = vadd.f32 %v2020_v26, %v843_v29  ;;  %v825_v34 = vmul.f32 %v2015_v24, %v592_v30  ;;  %v841_v35 = vmul.f32 %v2015_v24, %v656_v31 }
 0x127   : > { %v1542_v36 = vpop.f32.mrf.mxu0  ;;  %v1558_v37 = vpop.f32.mrf.mxu1 }
 0x128   : > { %vm898_vm0 = vcmp.gt.f32.partialorder %v866_v32, 0.0  ;;  %v930_v38 = vmul.f32 0.1, %v866_v32  ;;  %vm914_vm1 = vcmp.gt.f32.partialorder %v882_v33, 0.0  ;;  %v946_v39 = vmul.f32 0.1, %v882_v33 }
 0x129   : > { %v864_v40 = vadd.f32 %v2020_v26, %v825_v34  ;;  %v880_v41 = vadd.f32 %v2020_v26, %v841_v35  ;;  %v828_v42 = vmul.f32 %v1542_v36, %v2015_v24  ;;  %v844_v43 = vmul.f32 %v1558_v37, %v2015_v24  ;;  %v595_v44 = vpop.f32.mrf.mxu0  ;;  %v659_v45 = vpop.f32.mrf.mxu1 }
 0x12a   : > { %v962_v46 = vsel %vm898_vm0, %v866_v32, %v930_v38  ;;  %v978_v47 = vsel %vm914_vm1, %v882_v33, %v946_v39  ;;  %v826_v48 = vmul.f32 %v2015_v24, %v595_v44  ;;  %v842_v49 = vmul.f32 %v2015_v24, %v659_v45 }
 0x12b   : > { %vm896_vm2 = vcmp.gt.f32.partialorder %v864_v40, 0.0  ;;  %v928_v50 = vmul.f32 0.1, %v864_v40  ;;  %vm912_vm3 = vcmp.gt.f32.partialorder %v880_v41, 0.0  ;;  %v944_v51 = vmul.f32 0.1, %v880_v41  ;;  %v1545_v52 = vpop.f32.mrf.mxu0  ;;  %v1561_v53 = vpop.f32.mrf.mxu1 }
 0x12c   : > { %v867_v54 = vadd.f32 %v2020_v26, %v828_v42  ;;  %v883_v55 = vadd.f32 %v2020_v26, %v844_v43  ;;  %v865_v56 = vadd.f32 %v2020_v26, %v826_v48  ;;  %v881_v57 = vadd.f32 %v2020_v26, %v842_v49 }
 0x12d   : > { %v960_v58 = vsel %vm896_vm2, %v864_v40, %v928_v50  ;;  %v976_v59 = vsel %vm912_vm3, %v880_v41, %v944_v51  ;;  %v831_v60 = vmul.f32 %v1545_v52, %v2015_v24  ;;  %v847_v61 = vmul.f32 %v1561_v53, %v2015_v24  ;;  %v608_v62 = vpop.f32.mrf.mxu0  ;;  %v672_v63 = vpop.f32.mrf.mxu1 }
 0x12e   : > { %vm899_vm4 = vcmp.gt.f32.partialorder %v867_v54, 0.0  ;;  %v931_v0 = vmul.f32 0.1, %v867_v54  ;;  %vm915_vm5 = vcmp.gt.f32.partialorder %v883_v55, 0.0  ;;  %v947_v1 = vmul.f32 0.1, %v883_v55 }
 0x12f   : > { %vm897_vm6 = vcmp.gt.f32.partialorder %v865_v56, 0.0  ;;  %v929_v2 = vmul.f32 0.1, %v865_v56  ;;  %vm913_vm7 = vcmp.gt.f32.partialorder %v881_v57, 0.0  ;;  %v945_v3 = vmul.f32 0.1, %v881_v57  ;;  %v1546_v4 = vpop.f32.mrf.mxu0  ;;  %v1562_v5 = vpop.f32.mrf.mxu1 }
 0x130   : > { %v963_v6 = vsel %vm899_vm4, %v867_v54, %v931_v0  ;;  %v979_v7 = vsel %vm915_vm5, %v883_v55, %v947_v1  ;;  %v870_v8 = vadd.f32 %v2020_v26, %v831_v60  ;;  %v886_v9 = vadd.f32 %v2020_v26, %v847_v61 }
 0x131   : > { %v1412_v10 = vpack.c.bf16 %v963_v6, %v962_v46  ;;  %v1452_v11 = vpack.c.bf16 %v979_v7, %v978_v47  ;;  %v961_v12 = vsel %vm897_vm6, %v865_v56, %v929_v2  ;;  %v977_v13 = vsel %vm913_vm7, %v881_v57, %v945_v3  ;;  %v611_v14 = vpop.f32.mrf.mxu0  ;;  %v675_v15 = vpop.f32.mrf.mxu1 }
 0x132   : > { %v1407_v16 = vpack.c.bf16 %v961_v12, %v960_v58  ;;  %v1447_v17 = vpack.c.bf16 %v977_v13, %v976_v59  ;;  %vm902_vm8 = vcmp.gt.f32.partialorder %v870_v8, 0.0  ;;  %v934_v18 = vmul.f32 0.1, %v870_v8 }
 0x133   : > { %1484 = vst [vmem:[%s2044_s8 + $0x8] sm:$0xff] %v1412_v10   ;;  %1492 = vst [vmem:[%s2044_s8 + $0x48] sm:$0xff] %v1452_v11   ;;  %vm918_vm9 = vcmp.gt.f32.partialorder %v886_v9, 0.0  ;;  %v950_v19 = vmul.f32 0.1, %v886_v9  ;;  %v829_v20 = vmul.f32 %v2015_v24, %v608_v62  ;;  %v845_v21 = vmul.f32 %v2015_v24, %v672_v63  ;;  %v1549_v22 = vpop.f32.mrf.mxu0  ;;  %v1565_v23 = vpop.f32.mrf.mxu1 }
 0x134   : > { %1408 = vst [vmem:[%s2044_s8] sm:$0xff] %v1407_v16   ;;  %1491 = vst [vmem:[%s2044_s8 + $0x40] sm:$0xff] %v1447_v17   ;;  %v966_v25 = vsel %vm902_vm8, %v870_v8, %v934_v18  ;;  %v832_v27 = vmul.f32 %v1546_v4, %v2015_v24  ;;  %v848_v28 = vmul.f32 %v1562_v5, %v2015_v24 }
 0x135   : > { %v830_v29 = vmul.f32 %v2015_v24, %v611_v14  ;;  %v982_v30 = vsel %vm918_vm9, %v886_v9, %v950_v19  ;;  %v868_v31 = vadd.f32 %v2020_v26, %v829_v20  ;;  %v884_v32 = vadd.f32 %v2020_v26, %v845_v21  ;;  %v624_v34 = vpop.f32.mrf.mxu0  ;;  %v688_v35 = vpop.f32.mrf.mxu1 }
 0x136   : > { %v846_v33 = vmul.f32 %v2015_v24, %v675_v15  ;;  %v871_v36 = vadd.f32 %v2020_v26, %v832_v27  ;;  %v887_v37 = vadd.f32 %v2020_v26, %v848_v28  ;;  %v835_v39 = vmul.f32 %v1549_v22, %v2015_v24 }
 0x137   : > { %v869_v38 = vadd.f32 %v2020_v26, %v830_v29  ;;  %vm900_vm10 = vcmp.gt.f32.partialorder %v868_v31, 0.0  ;;  %v932_v40 = vmul.f32 0.1, %v868_v31  ;;  %vm916_vm11 = vcmp.gt.f32.partialorder %v884_v32, 0.0  ;;  %v1550_v42 = vpop.f32.mrf.mxu0  ;;  %v1566_v43 = vpop.f32.mrf.mxu1 }
 0x138   : > { %v948_v41 = vmul.f32 0.1, %v884_v32  ;;  %vm903_vm12 = vcmp.gt.f32.partialorder %v871_v36, 0.0  ;;  %v935_v44 = vmul.f32 0.1, %v871_v36  ;;  %vm919_vm13 = vcmp.gt.f32.partialorder %v887_v37, 0.0 }
 0x139   : > { %v951_v45 = vmul.f32 0.1, %v887_v37  ;;  %v964_v46 = vsel %vm900_vm10, %v868_v31, %v932_v40  ;;  %vm901_vm14 = vcmp.gt.f32.partialorder %v869_v38, 0.0  ;;  %v933_v48 = vmul.f32 0.1, %v869_v38  ;;  %v627_v49 = vpop.f32.mrf.mxu0  ;;  %v691_v50 = vpop.f32.mrf.mxu1 }
 0x13a   : > { %v980_v47 = vsel %vm916_vm11, %v884_v32, %v948_v41  ;;  %v967_v51 = vsel %vm903_vm12, %v871_v36, %v935_v44  ;;  %v885_v53 = vadd.f32 %v2020_v26, %v846_v33  ;;  %v874_v54 = vadd.f32 %v2020_v26, %v835_v39 }
 0x13b   : > { %v983_v52 = vsel %vm919_vm13, %v887_v37, %v951_v45  ;;  %v1422_v55 = vpack.c.bf16 %v967_v51, %v966_v25  ;;  %v965_v57 = vsel %vm901_vm14, %v869_v38, %v933_v48  ;;  %v851_v58 = vmul.f32 %v1565_v23, %v2015_v24  ;;  %v1553_v59 = vpop.f32.mrf.mxu0  ;;  %v1569_v2 = vpop.f32.mrf.mxu1 }
 0x13c   : > { %v1462_v56 = vpack.c.bf16 %v983_v52, %v982_v30  ;;  %v1417_v60 = vpack.c.bf16 %v965_v57, %v964_v46  ;;  %vm917_vm15 = vcmp.gt.f32.partialorder %v885_v53, 0.0  ;;  %v949_v61 = vmul.f32 0.1, %v885_v53 }
 0x13d   : > { %vm906_vm0 = vcmp.gt.f32.partialorder %v874_v54, 0.0  ;;  %1486 = vst [vmem:[%s2044_s8 + $0x18] sm:$0xff] %v1422_v55   ;;  %v938_v62 = vmul.f32 0.1, %v874_v54  ;;  %v890_v63 = vadd.f32 %v2020_v26, %v851_v58  ;;  %v833_v0 = vmul.f32 %v2015_v24, %v624_v34  ;;  %v640_v7 = vpop.f32.mrf.mxu0  ;;  %v704_v18 = vpop.f32.mrf.mxu1 }
 0x13e   : > { %1494 = vst [vmem:[%s2044_s8 + $0x58] sm:$0xff] %v1462_v56   ;;  %v849_v1 = vmul.f32 %v2015_v24, %v688_v35  ;;  %1485 = vst [vmem:[%s2044_s8 + $0x10] sm:$0xff] %v1417_v60   ;;  %v981_v3 = vsel %vm917_vm15, %v885_v53, %v949_v61  ;;  %v836_v4 = vmul.f32 %v1550_v42, %v2015_v24 }
 0x13f   : > { %v852_v5 = vmul.f32 %v1566_v43, %v2015_v24  ;;  %v834_v6 = vmul.f32 %v2015_v24, %v627_v49  ;;  %v1457_v8 = vpack.c.bf16 %v981_v3, %v980_v47  ;;  %vm922_vm1 = vcmp.gt.f32.partialorder %v890_v63, 0.0  ;;  %v1554_v22 = vpop.f32.mrf.mxu0  ;;  %v1570_v33 = vpop.f32.mrf.mxu1 }
 0x140   : > { %v954_v9 = vmul.f32 0.1, %v890_v63  ;;  %v872_v10 = vadd.f32 %v2020_v26, %v833_v0  ;;  %v888_v11 = vadd.f32 %v2020_v26, %v849_v1  ;;  %v875_v12 = vadd.f32 %v2020_v26, %v836_v4 }
 0x141   : > { %v891_v13 = vadd.f32 %v2020_v26, %v852_v5  ;;  %1493 = vst [vmem:[%s2044_s8 + $0x50] sm:$0xff] %v1457_v8   ;;  %v970_v14 = vsel %vm906_vm0, %v874_v54, %v938_v62  ;;  %v873_v15 = vadd.f32 %v2020_v26, %v834_v6  ;;  %v850_v16 = vmul.f32 %v2015_v24, %v691_v50  ;;  %v643_v38 = vpop.f32.mrf.mxu0  ;;  %v707_v50 = vpop.f32.mrf.mxu1 }
 0x142   : > { %v839_v17 = vmul.f32 %v1553_v59, %v2015_v24  ;;  %v986_v19 = vsel %vm922_vm1, %v890_v63, %v954_v9  ;;  %vm904_vm2 = vcmp.gt.f32.partialorder %v872_v10, 0.0  ;;  %v936_v20 = vmul.f32 0.1, %v872_v10 }
 0x143   : > { %v952_v21 = vmul.f32 0.1, %v888_v11  ;;  %vm907_vm3 = vcmp.gt.f32.partialorder %v875_v12, 0.0  ;;  %v939_v23 = vmul.f32 0.1, %v875_v12  ;;  %vm923_vm4 = vcmp.gt.f32.partialorder %v891_v13, 0.0 }
 0x144   : > { %v955_v25 = vmul.f32 0.1, %v891_v13  ;;  %v968_v27 = vsel %vm904_vm2, %v872_v10, %v936_v20  ;;  %vm920_vm5 = vcmp.gt.f32.partialorder %v888_v11, 0.0  ;;  %vm905_vm6 = vcmp.gt.f32.partialorder %v873_v15, 0.0 }
 0x145   : > { %v937_v28 = vmul.f32 0.1, %v873_v15  ;;  %v971_v29 = vsel %vm907_vm3, %v875_v12, %v939_v23  ;;  %v889_v31 = vadd.f32 %v2020_v26, %v850_v16  ;;  %v878_v32 = vadd.f32 %v2020_v26, %v839_v17 }
 0x146   : > { %v987_v30 = vsel %vm923_vm4, %v891_v13, %v955_v25  ;;  %v1432_v34 = vpack.c.bf16 %v971_v29, %v970_v14  ;;  %v855_v37 = vmul.f32 %v1569_v2, %v2015_v24  ;;  %v984_v39 = vsel %vm920_vm5, %v888_v11, %v952_v21 }
 0x147   : > { %v1472_v35 = vpack.c.bf16 %v987_v30, %v986_v19  ;;  %v969_v36 = vsel %vm905_vm6, %v873_v15, %v937_v28  ;;  %vm921_vm7 = vcmp.gt.f32.partialorder %v889_v31, 0.0  ;;  %v953_v41 = vmul.f32 0.1, %v889_v31 }
 0x148   : > { %v1427_v40 = vpack.c.bf16 %v969_v36, %v968_v27  ;;  %1488 = vst [vmem:[%s2044_s8 + $0x28] sm:$0xff] %v1432_v34   ;;  %v942_v42 = vmul.f32 0.1, %v878_v32  ;;  %v894_v43 = vadd.f32 %v2020_v26, %v855_v37  ;;  %v837_v44 = vmul.f32 %v2015_v24, %v640_v7 }
 0x149   : > { %1496 = vst [vmem:[%s2044_s8 + $0x68] sm:$0xff] %v1472_v35   ;;  %v853_v45 = vmul.f32 %v2015_v24, %v704_v18  ;;  %v985_v46 = vsel %vm921_vm7, %v889_v31, %v953_v41  ;;  %v840_v47 = vmul.f32 %v1554_v22, %v2015_v24  ;;  %v856_v48 = vmul.f32 %v1570_v33, %v2015_v24 }
 0x14a   : > { %1487 = vst [vmem:[%s2044_s8 + $0x20] sm:$0xff] %v1427_v40   ;;  %v838_v49 = vmul.f32 %v2015_v24, %v643_v38  ;;  %v1467_v51 = vpack.c.bf16 %v985_v46, %v984_v39  ;;  %vm910_vm8 = vcmp.gt.f32.partialorder %v878_v32, 0.0  ;;  %v958_v52 = vmul.f32 0.1, %v894_v43 }
 0x14b   : > { %v876_v53 = vadd.f32 %v2020_v26, %v837_v44  ;;  %v892_v54 = vadd.f32 %v2020_v26, %v853_v45  ;;  %v879_v55 = vadd.f32 %v2020_v26, %v840_v47  ;;  %v895_v56 = vadd.f32 %v2020_v26, %v856_v48 }
 0x14c   : > { %1495 = vst [vmem:[%s2044_s8 + $0x60] sm:$0xff] %v1467_v51   ;;  %vm926_vm9 = vcmp.gt.f32.partialorder %v894_v43, 0.0  ;;  %v877_v57 = vadd.f32 %v2020_v26, %v838_v49  ;;  %v854_v58 = vmul.f32 %v2015_v24, %v707_v50  ;;  %v974_v59 = vsel %vm910_vm8, %v878_v32, %v942_v42 }
 0x14d   : > { %vm908_vm10 = vcmp.gt.f32.partialorder %v876_v53, 0.0  ;;  %v940_v60 = vmul.f32 0.1, %v876_v53  ;;  %vm911_vm11 = vcmp.gt.f32.partialorder %v879_v55, 0.0  ;;  %v943_v61 = vmul.f32 0.1, %v879_v55 }
 0x14e   : > { %vm927_vm12 = vcmp.gt.f32.partialorder %v895_v56, 0.0  ;;  %v959_v62 = vmul.f32 0.1, %v895_v56  ;;  %v990_v63 = vsel %vm926_vm9, %v894_v43, %v958_v52  ;;  %vm924_vm13 = vcmp.gt.f32.partialorder %v892_v54, 0.0 }
 0x14f   : > { %vm909_vm14 = vcmp.gt.f32.partialorder %v877_v57, 0.0  ;;  %v941_v0 = vmul.f32 0.1, %v877_v57  ;;  %v956_v1 = vmul.f32 0.1, %v892_v54  ;;  %v975_v2 = vsel %vm911_vm11, %v879_v55, %v943_v61 }
 0x150   : > { %v991_v3 = vsel %vm927_vm12, %v895_v56, %v959_v62  ;;  %v893_v24 = vadd.f32 %v2020_v26, %v854_v58  ;;  %v972_v4 = vsel %vm908_vm10, %v876_v53, %v940_v60  ;;  %v1442_v5 = vpack.c.bf16 %v975_v2, %v974_v59 }
 0x151   : > { %v1482_v6 = vpack.c.bf16 %v991_v3, %v990_v63  ;;  %v973_v7 = vsel %vm909_vm14, %v877_v57, %v941_v0  ;;  %v988_v10 = vsel %vm924_vm13, %v892_v54, %v956_v1 }
 0x152   : > { %v1437_v8 = vpack.c.bf16 %v973_v7, %v972_v4  ;;  %vm925_vm15 = vcmp.gt.f32.partialorder %v893_v24, 0.0  ;;  %v957_v9 = vmul.f32 0.1, %v893_v24  ;;  %1490 = vst [vmem:[%s2044_s8 + $0x38] sm:$0xff] %v1442_v5  }
 0x153   : > { %1498 = vst [vmem:[%s2044_s8 + $0x78] sm:$0xff] %v1482_v6  }
 0x154   : > { %1489 = vst [vmem:[%s2044_s8 + $0x30] sm:$0xff] %v1437_v8   ;;  %v989_v11 = vsel %vm925_vm15, %v893_v24, %v957_v9 }
 0x155   : > { %v1477_v26 = vpack.c.bf16 %v989_v11, %v988_v10 }
 0x157   : > { %1497 = vst [vmem:[%s2044_s8 + $0x70] sm:$0xff] %v1477_v26  }
 0x158   : > { %1755 = shalt.err (!%p1752_p3)
}
 0x159   : > { %s1756_s30 = scalar_lea.hbm %s2112_s11, 2048  ;;  %s1760_s25 = scalar_lea.hbm %s2166_s4, 32768 }
 0x15a   : > { %p1757_p5 = scmp.ne.s32.totalorder %s2112_s11, %s1756_s30  ;;  %p1761_p9 = scmp.lt.s32.totalorder %s2112_s11, %s2166_s4 }
 0x15b   : > { %p1762_p11 = scmp.lt.s32.totalorder %s1760_s25, %s1756_s30 }
 0x15c   : > { %p1758_p7 = pnand %p1757_p5, %p2183_p4 }
 0x15d   : > { %p1763_p10 = por %p1762_p11, %p1761_p9 }
 0x15e   : > { %p1759_p6 = pneg %p1758_p7 }
 0x160   : > { %p1764_p1 = pnand %p1763_p10, %p1759_p6 }
 0x162   : > { %1767 = shalt.err (!%p1764_p1)
}
 0x163   : > { %s1833_s8 = smov 64   ;;  %s1834_s9 = smov 4  }
 0x164   : > { %1593 = dma.vmem_to_hbm [thread:$0]  (%p2183_p4), %s2114_s10, 2048, %s2112_s11, %s1153_s18, %s1833_s8, %s1833_s8, %s1834_s9  }
 0x165 PF: > { %p1610_p8 = scmp.ge.s32.totalorder %s1826_s20, 2  ;;  %s1182_s24 = sand.u32 1, %s1806_s15  }
 0x166   : > { %p2184_p12 = scmp.ne.s32.totalorder %s2174_s26, 0  ;;  %s1183_s14 = scalar_lea.sflag [#allocation5], %s1182_s24 }
 0x168   : > { %p1604_p13 = pnand %p1610_p8, %p2184_p12 }
 0x16a   : > { %p1605_p0 = pneg %p1604_p13 }
 0x16c   : > { %1801 = dma.done.wait (%p1605_p0), %s1183_s14, 2048  }
 0x16d   : > { %1803 = vsyncadd (%p1605_p0), %s1183_s14, 4294965248  ;;  %s21_s20 = sadd.s32 1, %s1826_s20   ;;  %s2185_s15 = smov %s1810_s16 }
 0x16e   : > { %p18_p2 = scmp.ge.s32.totalorder %s21_s20, 18   ;;  %s2186_s16 = smov %s1814_s17 }
 0x16f   : > { %s2187_s17 = smov %s1958_s28  ;;  %s2188_s18 = smov %s1822_s19 }
 0x170   : > { %s2189_s19 = smov %s2191_s5  ;;  %20 = sbr.rel (!%p18_p2) target bundleno = 9 (0x9), region = 100 }
 0x175   :  { %1188 = vsyncpa [#allocation4], 1 }
 0x176   :  { %1190 = vsyncpa [#allocation4 + $0x1], 1 }
 0x177   :  { %1191 = vsyncpa [#allocation7], 1 }
 0x178   :  { %1192 = vsyncpa [#allocation5], 1 }
 0x179   :  { %1194 = vsyncpa [#allocation5 + $0x1], 1 }

</bundles_post_ra>
